<compile_context>
chip_gen: v5e
topology: v5e:2x2
jax: 0.10.0
libtpu: 0.0.40
codegen_flags: <defaults>
</compile_context>

<pallas_src>
import math
import functools

import jax
import jax.numpy as jnp
from jax import lax
from jax.experimental import pallas as pl
from jax.experimental.pallas import tpu as pltpu


def _round_up(n, m):
    return ((n + m - 1) // m) * m


def _layer_norm(x, gamma, beta, eps=1e-5):
    # PyTorch LayerNorm: biased variance over last dim, eps inside the sqrt.
    mu = jnp.mean(x, axis=-1, keepdims=True)
    xc = x - mu
    var = jnp.mean(xc * xc, axis=-1, keepdims=True)
    inv = lax.rsqrt(var + eps)
    return xc * inv * gamma + beta


def _phi_kernel(x_ref, pe_ref, wslab_ref, w2_ref, vec_ref, o_ref,
                *, d_model, hidden, off_wo, off_w1):
    d = d_model

    # One batch element per grid step: x_ref block is (1, S, d).
    x = x_ref[0] * jnp.float32(math.sqrt(d)) + pe_ref[...]   # scale + PE (dropout = id)

    # --- unpack the small-parameter slab (f32) ---
    b_qkv = vec_ref[0:1, 0:3 * d]
    b_o = vec_ref[1:2, 0:d]
    b_1 = vec_ref[2:3, 0:hidden]
    b_2 = vec_ref[3:4, 0:d]
    g1 = vec_ref[4:5, 0:d]
    be1 = vec_ref[5:6, 0:d]
    g2 = vec_ref[6:7, 0:d]
    be2 = vec_ref[7:8, 0:d]

    # --- fused QKV projection: one (S, d) @ (d, 3d) MXU push, bf16 in / f32 acc ---
    qkv = jnp.dot(x.astype(jnp.bfloat16), wslab_ref[:, 0:3 * d],
                  preferred_element_type=jnp.float32) + b_qkv
    q = qkv[:, 0:d]
    k = qkv[:, d:2 * d]
    v = qkv[:, 2 * d:3 * d]

    # --- self attention (nhead=1, head_dim=d_model), per-batch S x S, no mask ---
    scale = jnp.float32(1.0 / math.sqrt(d))
    scores = lax.dot_general(q.astype(jnp.bfloat16), k.astype(jnp.bfloat16),
                             dimension_numbers=(((1,), (1,)), ((), ())),
                             preferred_element_type=jnp.float32) * scale
    scores = scores - jnp.max(scores, axis=-1, keepdims=True)
    p = jnp.exp(scores)
    p = p * pl.reciprocal(jnp.sum(p, axis=-1, keepdims=True), approx=True)
    ctx = jnp.dot(p.astype(jnp.bfloat16), v.astype(jnp.bfloat16),
                  preferred_element_type=jnp.float32)
    attn = jnp.dot(ctx.astype(jnp.bfloat16), wslab_ref[:, off_wo:off_wo + d],
                   preferred_element_type=jnp.float32) + b_o

    # residual + LayerNorm1 (post-norm, PyTorch default norm_first=False)
    x = _layer_norm(x + attn, g1, be1)

    # --- feed forward: linear1 -> relu -> linear2 ---
    h = jnp.dot(x.astype(jnp.bfloat16), wslab_ref[:, off_w1:off_w1 + hidden],
                preferred_element_type=jnp.float32) + b_1
    h = jnp.maximum(h, 0.0)
    ff = jnp.dot(h.astype(jnp.bfloat16), w2_ref[...],
                 preferred_element_type=jnp.float32) + b_2

    # residual + LayerNorm2
    o_ref[0] = _layer_norm(x + ff, g2, be2)


def make_positional_encoding(max_len, d_model):
    # Matches the reference (note: it uses log(1000.0), not 10000).
    position = jnp.arange(max_len, dtype=jnp.float32)[:, None]
    div_term = jnp.exp(jnp.arange(0, d_model, 2, dtype=jnp.float32)
                       * (-math.log(1000.0) / d_model))
    pe = jnp.zeros((max_len, d_model), dtype=jnp.float32)
    pe = pe.at[:, 0::2].set(jnp.sin(position * div_term))
    pe = pe.at[:, 1::2].set(jnp.cos(position * div_term))
    return pe


def init_phi_params(key, d_model, hidden):
    ks = jax.random.split(key, 6)
    s = 0.02
    p = {}
    # fused attention in-proj (stored transposed: y = x @ W + b), columns = [q | k | v]
    p["wqkv"] = jax.random.normal(ks[0], (d_model, 3 * d_model), jnp.float32) * s
    p["bqkv"] = jnp.zeros((3 * d_model,), jnp.float32)
    p["wo"] = jax.random.normal(ks[1], (d_model, d_model), jnp.float32) * s
    p["bo"] = jax.random.normal(ks[2], (d_model,), jnp.float32) * s
    # feed-forward
    p["w1"] = jax.random.normal(ks[3], (d_model, hidden), jnp.float32) * s
    p["b1"] = jnp.zeros((hidden,), jnp.float32)
    p["w2"] = jax.random.normal(ks[4], (hidden, d_model), jnp.float32) * s
    p["b2"] = jax.random.normal(ks[5], (d_model,), jnp.float32) * s
    # layer norms
    p["g1"] = jnp.ones((d_model,), jnp.float32)
    p["be1"] = jnp.zeros((d_model,), jnp.float32)
    p["g2"] = jnp.ones((d_model,), jnp.float32)
    p["be2"] = jnp.zeros((d_model,), jnp.float32)
    return p


def phi_forward(x_sbd, params, pe_full):
    """x_sbd: (S, B, d_model) float32 -> (S, B*d_model), same as Phi.forward."""
    S, B, d = x_sbd.shape
    hidden = params["w1"].shape[1]

    # --- pack weights into a bf16 slab with 128-lane-aligned segments -------------
    off_wo = _round_up(3 * d, 128)
    off_w1 = off_wo + _round_up(d, 128)
    w_cols = off_w1 + _round_up(hidden, 128)
    w_slab = jnp.zeros((d, w_cols), jnp.float32)
    w_slab = w_slab.at[:, 0:3 * d].set(params["wqkv"])
    w_slab = w_slab.at[:, off_wo:off_wo + d].set(params["wo"])
    w_slab = w_slab.at[:, off_w1:off_w1 + hidden].set(params["w1"])
    w_slab = w_slab.astype(jnp.bfloat16)
    w2 = params["w2"].astype(jnp.bfloat16)

    # --- pack the 8 bias / LayerNorm vectors into one f32 (8, >=128) slab ---------
    v_cols = _round_up(max(3 * d, hidden, d), 128)
    vec_rows = [params["bqkv"], params["bo"], params["b1"], params["b2"],
                params["g1"], params["be1"], params["g2"], params["be2"]]
    vec = jnp.zeros((8, v_cols), jnp.float32)
    for r, row in enumerate(vec_rows):
        vec = vec.at[r, :row.shape[0]].set(row)

    # Small one-time layout pass so each grid step gets a contiguous (S, d) slice.
    x_bsd = jnp.transpose(x_sbd, (1, 0, 2))          # (B, S, d)
    pe = pe_full[:S]                                  # (S, d), shared by all batches

    kernel = functools.partial(_phi_kernel, d_model=d, hidden=hidden,
                               off_wo=off_wo, off_w1=off_w1)

    out = pl.pallas_call(
        kernel,
        out_shape=jax.ShapeDtypeStruct((B, S, d), jnp.float32),
        grid_spec=pltpu.PrefetchScalarGridSpec(
            num_scalar_prefetch=0,
            grid=(B,),
            in_specs=[
                pl.BlockSpec((1, S, d), lambda b: (b, 0, 0)),        # per-batch activations
                pl.BlockSpec((S, d), lambda b: (0, 0)),              # PE (resident)
                pl.BlockSpec((d, w_cols), lambda b: (0, 0)),         # weight slab (resident)
                pl.BlockSpec((hidden, d), lambda b: (0, 0)),         # w2 (resident)
                pl.BlockSpec((8, v_cols), lambda b: (0, 0)),         # bias/LN slab (resident)
            ],
            out_specs=pl.BlockSpec((1, S, d), lambda b: (b, 0, 0)),
        ),
        compiler_params=pltpu.CompilerParams(
            # Batch axis is independent -> megacore-shardable on v7x.
            dimension_semantics=("parallel",),
            # Explicit scoped-VMEM limit: raises v5e's 16 MiB default, safe on v6e/v7x.
            vmem_limit_bytes=32 * 1024 * 1024,
        ),
    )(x_bsd, pe, w_slab, w2, vec)

    # Back to the PyTorch flatten(start_dim=1) layout: (B,S,d) -> (S,B,d) -> (S, B*d).
    return jnp.transpose(out, (1, 0, 2)).reshape(S, B * d)


if __name__ == "__main__":
    d_model = 32
    hidden = 64
    max_len = 16
    S, B = 8, 2

    key = jax.random.PRNGKey(0)
    kx, kp = jax.random.split(key)

    x = jax.random.normal(kx, (S, B, d_model), jnp.float32)
    params = init_phi_params(kp, d_model, hidden)
    pe_full = make_positional_encoding(max_len, d_model)

    y = jax.jit(phi_forward)(x, params, pe_full)
    y = jax.block_until_ready(y)

    assert y.shape == (S, B * d_model)
    assert bool(jnp.all(jnp.isfinite(y)))
    print("KERNEL_OK")
</pallas_src>

<mosaic_0001>
module attributes {stable_mosaic.version = 11 : i64} {
  func.func @_phi_kernel(%arg0: i32, %arg1: memref<1x8x32xf32, #tpu.memory_space<vmem>>, %arg2: memref<8x32xf32, #tpu.memory_space<vmem>>, %arg3: memref<32x384xbf16, #tpu.memory_space<vmem>>, %arg4: memref<64x32xbf16, #tpu.memory_space<vmem>>, %arg5: memref<8x128xf32, #tpu.memory_space<vmem>>, %arg6: memref<1x8x32xf32, #tpu.memory_space<vmem>>) attributes {dimension_semantics = [#tpu.dimension_semantics<parallel>], iteration_bounds = array<i64: 2>, scalar_prefetch = 0 : i64, scratch_operands = 0 : i64, tpu.core_type = #tpu.core_type<tc>, window_params = [{transform_indices = @transform_0, window_bounds = array<i64: 1, 8, 32>}, {pipeline_mode = #tpu.pipeline_mode<synchronous>, transform_indices = @transform_1, window_bounds = array<i64: 8, 32>}, {pipeline_mode = #tpu.pipeline_mode<synchronous>, transform_indices = @transform_2, window_bounds = array<i64: 32, 384>}, {pipeline_mode = #tpu.pipeline_mode<synchronous>, transform_indices = @transform_3, window_bounds = array<i64: 64, 32>}, {pipeline_mode = #tpu.pipeline_mode<synchronous>, transform_indices = @transform_4, window_bounds = array<i64: 8, 128>}, {transform_indices = @transform_5, window_bounds = array<i64: 1, 8, 32>}]} {
    %c0 = arith.constant 0 : index
    %c0_0 = arith.constant 0 : index
    %c0_1 = arith.constant 0 : index
    %0 = vector.load %arg1[%c0, %c0_0, %c0_1] : memref<1x8x32xf32, #tpu.memory_space<vmem>>, vector<1x8x32xf32>
    %1 = vector.shape_cast %0 : vector<1x8x32xf32> to vector<8x32xf32>
    %cst = arith.constant 5.65685415 : f32
    %2 = vector.broadcast %cst : f32 to vector<8x32xf32>
    %3 = arith.mulf %1, %2 : vector<8x32xf32>
    %c0_2 = arith.constant 0 : index
    %c0_3 = arith.constant 0 : index
    %4 = vector.load %arg2[%c0_2, %c0_3] : memref<8x32xf32, #tpu.memory_space<vmem>>, vector<8x32xf32>
    %5 = arith.addf %3, %4 : vector<8x32xf32>
    %c0_4 = arith.constant 0 : index
    %c0_5 = arith.constant 0 : index
    %6 = vector.load %arg5[%c0_4, %c0_5] : memref<8x128xf32, #tpu.memory_space<vmem>>, vector<1x96xf32>
    %c1 = arith.constant 1 : index
    %c0_6 = arith.constant 0 : index
    %7 = vector.load %arg5[%c1, %c0_6] : memref<8x128xf32, #tpu.memory_space<vmem>>, vector<1x32xf32>
    %c2 = arith.constant 2 : index
    %c0_7 = arith.constant 0 : index
    %8 = vector.load %arg5[%c2, %c0_7] : memref<8x128xf32, #tpu.memory_space<vmem>>, vector<1x64xf32>
    %c3 = arith.constant 3 : index
    %c0_8 = arith.constant 0 : index
    %9 = vector.load %arg5[%c3, %c0_8] : memref<8x128xf32, #tpu.memory_space<vmem>>, vector<1x32xf32>
    %c4 = arith.constant 4 : index
    %c0_9 = arith.constant 0 : index
    %10 = vector.load %arg5[%c4, %c0_9] : memref<8x128xf32, #tpu.memory_space<vmem>>, vector<1x32xf32>
    %c5 = arith.constant 5 : index
    %c0_10 = arith.constant 0 : index
    %11 = vector.load %arg5[%c5, %c0_10] : memref<8x128xf32, #tpu.memory_space<vmem>>, vector<1x32xf32>
    %c6 = arith.constant 6 : index
    %c0_11 = arith.constant 0 : index
    %12 = vector.load %arg5[%c6, %c0_11] : memref<8x128xf32, #tpu.memory_space<vmem>>, vector<1x32xf32>
    %c7 = arith.constant 7 : index
    %c0_12 = arith.constant 0 : index
    %13 = vector.load %arg5[%c7, %c0_12] : memref<8x128xf32, #tpu.memory_space<vmem>>, vector<1x32xf32>
    %14 = arith.truncf %5 : vector<8x32xf32> to vector<8x32xbf16>
    %c0_13 = arith.constant 0 : index
    %c0_14 = arith.constant 0 : index
    %15 = vector.load %arg3[%c0_13, %c0_14] : memref<32x384xbf16, #tpu.memory_space<vmem>>, vector<32x96xbf16>
    %cst_15 = arith.constant dense<0.000000e+00> : vector<8x96xf32>
    %16 = tpu.matmul %14, %15, %cst_15 {dimension_numbers = #tpu.dot_dimension_numbers<[1], [0], [0], [1], [0, 0, 1, 1], [], []>} : vector<8x32xbf16>, vector<32x96xbf16>, vector<8x96xf32> -> vector<8x96xf32>
    %17 = vector.broadcast %6 : vector<1x96xf32> to vector<8x96xf32>
    %18 = arith.addf %16, %17 : vector<8x96xf32>
    %19 = vector.extract_strided_slice %18 {offsets = [0, 0], sizes = [8, 32], strides = [1, 1]} : vector<8x96xf32> to vector<8x32xf32>
    %20 = vector.extract_strided_slice %18 {offsets = [0, 32], sizes = [8, 32], strides = [1, 1]} : vector<8x96xf32> to vector<8x32xf32>
    %21 = vector.extract_strided_slice %18 {offsets = [0, 64], sizes = [8, 32], strides = [1, 1]} : vector<8x96xf32> to vector<8x32xf32>
    %22 = arith.truncf %19 : vector<8x32xf32> to vector<8x32xbf16>
    %23 = arith.truncf %20 : vector<8x32xf32> to vector<8x32xbf16>
    %cst_16 = arith.constant dense<0.000000e+00> : vector<8x8xf32>
    %24 = tpu.matmul %22, %23, %cst_16 {dimension_numbers = #tpu.dot_dimension_numbers<[1], [1], [0], [0], [0, 0, 1, 0], [], []>} : vector<8x32xbf16>, vector<8x32xbf16>, vector<8x8xf32> -> vector<8x8xf32>
    %cst_17 = arith.constant 0.176776692 : f32
    %25 = vector.broadcast %cst_17 : f32 to vector<8x8xf32>
    %26 = arith.mulf %24, %25 : vector<8x8xf32>
    %cst_18 = arith.constant dense<0xFF800000> : vector<8xf32>
    %27 = vector.multi_reduction <maximumf>, %26, %cst_18 [1] : vector<8x8xf32> to vector<8xf32>
    %28 = vector.shape_cast %27 : vector<8xf32> to vector<8x1xf32>
    %29 = vector.broadcast %28 : vector<8x1xf32> to vector<8x8xf32>
    %30 = arith.subf %26, %29 : vector<8x8xf32>
    %31 = math.exp %30 : vector<8x8xf32>
    %cst_19 = arith.constant dense<0.000000e+00> : vector<8xf32>
    %32 = vector.multi_reduction <add>, %31, %cst_19 [1] : vector<8x8xf32> to vector<8xf32>
    %33 = vector.shape_cast %32 : vector<8xf32> to vector<8x1xf32>
    %34 = tpu.reciprocal %33 {approx = true} : vector<8x1xf32> -> vector<8x1xf32>
    %35 = vector.broadcast %34 : vector<8x1xf32> to vector<8x8xf32>
    %36 = arith.mulf %31, %35 : vector<8x8xf32>
    %37 = arith.truncf %36 : vector<8x8xf32> to vector<8x8xbf16>
    %38 = arith.truncf %21 : vector<8x32xf32> to vector<8x32xbf16>
    %cst_20 = arith.constant dense<0.000000e+00> : vector<8x32xf32>
    %39 = tpu.matmul %37, %38, %cst_20 {dimension_numbers = #tpu.dot_dimension_numbers<[1], [0], [0], [1], [0, 0, 1, 1], [], []>} : vector<8x8xbf16>, vector<8x32xbf16>, vector<8x32xf32> -> vector<8x32xf32>
    %40 = arith.truncf %39 : vector<8x32xf32> to vector<8x32xbf16>
    %c0_21 = arith.constant 0 : index
    %c128 = arith.constant 128 : index
    %41 = vector.load %arg3[%c0_21, %c128] : memref<32x384xbf16, #tpu.memory_space<vmem>>, vector<32x32xbf16>
    %cst_22 = arith.constant dense<0.000000e+00> : vector<8x32xf32>
    %42 = tpu.matmul %40, %41, %cst_22 {dimension_numbers = #tpu.dot_dimension_numbers<[1], [0], [0], [1], [0, 0, 1, 1], [], []>} : vector<8x32xbf16>, vector<32x32xbf16>, vector<8x32xf32> -> vector<8x32xf32>
    %43 = vector.broadcast %7 : vector<1x32xf32> to vector<8x32xf32>
    %44 = arith.addf %42, %43 : vector<8x32xf32>
    %45 = arith.addf %5, %44 : vector<8x32xf32>
    %cst_23 = arith.constant dense<0.000000e+00> : vector<8xf32>
    %46 = vector.multi_reduction <add>, %45, %cst_23 [1] : vector<8x32xf32> to vector<8xf32>
    %47 = vector.shape_cast %46 : vector<8xf32> to vector<8x1xf32>
    %cst_24 = arith.constant 3.200000e+01 : f32
    %48 = vector.broadcast %cst_24 : f32 to vector<8x1xf32>
    %49 = arith.divf %47, %48 : vector<8x1xf32>
    %50 = vector.broadcast %49 : vector<8x1xf32> to vector<8x32xf32>
    %51 = arith.subf %45, %50 : vector<8x32xf32>
    %52 = arith.mulf %51, %51 : vector<8x32xf32>
    %cst_25 = arith.constant dense<0.000000e+00> : vector<8xf32>
    %53 = vector.multi_reduction <add>, %52, %cst_25 [1] : vector<8x32xf32> to vector<8xf32>
    %54 = vector.shape_cast %53 : vector<8xf32> to vector<8x1xf32>
    %cst_26 = arith.constant 3.200000e+01 : f32
    %55 = vector.broadcast %cst_26 : f32 to vector<8x1xf32>
    %56 = arith.divf %54, %55 : vector<8x1xf32>
    %cst_27 = arith.constant 9.99999974E-6 : f32
    %57 = vector.broadcast %cst_27 : f32 to vector<8x1xf32>
    %58 = arith.addf %56, %57 : vector<8x1xf32>
    %59 = math.rsqrt %58 : vector<8x1xf32>
    %60 = vector.broadcast %59 : vector<8x1xf32> to vector<8x32xf32>
    %61 = arith.mulf %51, %60 : vector<8x32xf32>
    %62 = vector.broadcast %10 : vector<1x32xf32> to vector<8x32xf32>
    %63 = arith.mulf %61, %62 : vector<8x32xf32>
    %64 = vector.broadcast %11 : vector<1x32xf32> to vector<8x32xf32>
    %65 = arith.addf %63, %64 : vector<8x32xf32>
    %66 = arith.truncf %65 : vector<8x32xf32> to vector<8x32xbf16>
    %c0_28 = arith.constant 0 : index
    %c256 = arith.constant 256 : index
    %67 = vector.load %arg3[%c0_28, %c256] : memref<32x384xbf16, #tpu.memory_space<vmem>>, vector<32x64xbf16>
    %cst_29 = arith.constant dense<0.000000e+00> : vector<8x64xf32>
    %68 = tpu.matmul %66, %67, %cst_29 {dimension_numbers = #tpu.dot_dimension_numbers<[1], [0], [0], [1], [0, 0, 1, 1], [], []>} : vector<8x32xbf16>, vector<32x64xbf16>, vector<8x64xf32> -> vector<8x64xf32>
    %69 = vector.broadcast %8 : vector<1x64xf32> to vector<8x64xf32>
    %70 = arith.addf %68, %69 : vector<8x64xf32>
    %cst_30 = arith.constant 0.000000e+00 : f32
    %71 = vector.broadcast %cst_30 : f32 to vector<8x64xf32>
    %72 = arith.maximumf %70, %71 : vector<8x64xf32>
    %73 = arith.truncf %72 : vector<8x64xf32> to vector<8x64xbf16>
    %c0_31 = arith.constant 0 : index
    %c0_32 = arith.constant 0 : index
    %74 = vector.load %arg4[%c0_31, %c0_32] : memref<64x32xbf16, #tpu.memory_space<vmem>>, vector<64x32xbf16>
    %cst_33 = arith.constant dense<0.000000e+00> : vector<8x32xf32>
    %75 = tpu.matmul %73, %74, %cst_33 {dimension_numbers = #tpu.dot_dimension_numbers<[1], [0], [0], [1], [0, 0, 1, 1], [], []>} : vector<8x64xbf16>, vector<64x32xbf16>, vector<8x32xf32> -> vector<8x32xf32>
    %76 = vector.broadcast %9 : vector<1x32xf32> to vector<8x32xf32>
    %77 = arith.addf %75, %76 : vector<8x32xf32>
    %78 = arith.addf %65, %77 : vector<8x32xf32>
    %cst_34 = arith.constant dense<0.000000e+00> : vector<8xf32>
    %79 = vector.multi_reduction <add>, %78, %cst_34 [1] : vector<8x32xf32> to vector<8xf32>
    %80 = vector.shape_cast %79 : vector<8xf32> to vector<8x1xf32>
    %cst_35 = arith.constant 3.200000e+01 : f32
    %81 = vector.broadcast %cst_35 : f32 to vector<8x1xf32>
    %82 = arith.divf %80, %81 : vector<8x1xf32>
    %83 = vector.broadcast %82 : vector<8x1xf32> to vector<8x32xf32>
    %84 = arith.subf %78, %83 : vector<8x32xf32>
    %85 = arith.mulf %84, %84 : vector<8x32xf32>
    %cst_36 = arith.constant dense<0.000000e+00> : vector<8xf32>
    %86 = vector.multi_reduction <add>, %85, %cst_36 [1] : vector<8x32xf32> to vector<8xf32>
    %87 = vector.shape_cast %86 : vector<8xf32> to vector<8x1xf32>
    %cst_37 = arith.constant 3.200000e+01 : f32
    %88 = vector.broadcast %cst_37 : f32 to vector<8x1xf32>
    %89 = arith.divf %87, %88 : vector<8x1xf32>
    %cst_38 = arith.constant 9.99999974E-6 : f32
    %90 = vector.broadcast %cst_38 : f32 to vector<8x1xf32>
    %91 = arith.addf %89, %90 : vector<8x1xf32>
    %92 = math.rsqrt %91 : vector<8x1xf32>
    %93 = vector.broadcast %92 : vector<8x1xf32> to vector<8x32xf32>
    %94 = arith.mulf %84, %93 : vector<8x32xf32>
    %95 = vector.broadcast %12 : vector<1x32xf32> to vector<8x32xf32>
    %96 = arith.mulf %94, %95 : vector<8x32xf32>
    %97 = vector.broadcast %13 : vector<1x32xf32> to vector<8x32xf32>
    %98 = arith.addf %96, %97 : vector<8x32xf32>
    %c0_39 = arith.constant 0 : index
    %c0_40 = arith.constant 0 : index
    %c0_41 = arith.constant 0 : index
    %99 = vector.load %arg6[%c0_39, %c0_40, %c0_41] : memref<1x8x32xf32, #tpu.memory_space<vmem>>, vector<1x8x32xf32>
    %100 = vector.shape_cast %99 : vector<1x8x32xf32> to vector<8x32xf32>
    %101 = vector.shape_cast %98 : vector<8x32xf32> to vector<1x8x32xf32>
    tpu.vector_store %arg6[%c0_39, %c0_40, %c0_41], %101 {strides = array<i32>} : memref<1x8x32xf32, #tpu.memory_space<vmem>>, vector<1x8x32xf32>,
    return
  }
  func.func @transform_0(%arg0: i32) -> (i32, i32, i32) {
    %c0_i32 = arith.constant 0 : i32
    %c0_i32_0 = arith.constant 0 : i32
    %c0_i32_1 = arith.constant 0 : i32
    return %arg0, %c0_i32, %c0_i32_0 : i32, i32, i32
  }
  func.func @transform_1(%arg0: i32) -> (i32, i32) {
    %c0_i32 = arith.constant 0 : i32
    %c0_i32_0 = arith.constant 0 : i32
    %c0_i32_1 = arith.constant 0 : i32
    return %c0_i32, %c0_i32_0 : i32, i32
  }
  func.func @transform_2(%arg0: i32) -> (i32, i32) {
    %c0_i32 = arith.constant 0 : i32
    %c0_i32_0 = arith.constant 0 : i32
    %c0_i32_1 = arith.constant 0 : i32
    return %c0_i32, %c0_i32_0 : i32, i32
  }
  func.func @transform_3(%arg0: i32) -> (i32, i32) {
    %c0_i32 = arith.constant 0 : i32
    %c0_i32_0 = arith.constant 0 : i32
    %c0_i32_1 = arith.constant 0 : i32
    return %c0_i32, %c0_i32_0 : i32, i32
  }
  func.func @transform_4(%arg0: i32) -> (i32, i32) {
    %c0_i32 = arith.constant 0 : i32
    %c0_i32_0 = arith.constant 0 : i32
    %c0_i32_1 = arith.constant 0 : i32
    return %c0_i32, %c0_i32_0 : i32, i32
  }
  func.func @transform_5(%arg0: i32) -> (i32, i32, i32) {
    %c0_i32 = arith.constant 0 : i32
    %c0_i32_0 = arith.constant 0 : i32
    %c0_i32_1 = arith.constant 0 : i32
    return %arg0, %c0_i32, %c0_i32_0 : i32, i32, i32
  }
}

</mosaic_0001>

<bundles_post_ra>
// kernel: phi_forward.1
= control target key start
LH: loop header
LB: loop body
LE: loop exit
PB: predicated region body
PF: predicated region fallthrough
CT: control target
= control target key end

     0   :  { %s697_s18 = smov 0   ;;  %s815_s0 = inlined_call_operand.vmem [shape: f32[2,8,32], index: 0, kind: input, shape index: {}]   ;;  %s816_s1 = inlined_call_operand.vmem [shape: f32[8,32], index: 1, kind: input, shape index: {}]   ;;  %s817_s2 = inlined_call_operand.vmem [shape: bf16[32,384], index: 2, kind: input, shape index: {}]   ;;  %s818_s3 = inlined_call_operand.vmem [shape: bf16[64,32], index: 3, kind: input, shape index: {}]   ;;  %s819_s4 = inlined_call_operand.vmem [shape: f32[8,128], index: 4, kind: input, shape index: {}]   ;;  %s820_s5 = inlined_call_operand.vmem [shape: f32[2,8,32], index: 5, kind: output, shape index: {}]  }
   0x1 LB: > { %s562_s19 = sadd.s32 4294967295, %s662_s18   ;;  %p566_p0 = scmp.ge.s32.totalorder %s662_s18, 1  ;;  %s662_s18 = sphi %s697_s18, %s15_s18  }
   0x2   : > { %p186_p1 = scmp.lt.s32.totalorder %s662_s18, 3 }
   0x4   : > { %p187_p2 = pnand %p566_p0, %p186_p1 }
   0x5   : > { %p212_p3 = scmp.lt.s32.totalorder (!%p187_p2), %s562_s19, 1  ;;  %s664_s11 = smov (!%p187_p2), 96  }
   0x6   : > { %190 = sbr.rel (%p187_p2) target bundleno = 1753 (0x6d9), region = 40  ;;  %s665_s12 = smov (!%p187_p2), 64  }
   0xb   : > { %v575_v0 = vld [vmem:[%s817_s2 + $0x18] sm:$0xf]  ;;  %v618_v1 = vld [vmem:[%s817_s2 + $0x20] sm:$0xf0]  ;;  %v571_v2 = vld [vmem:[%s817_s2] sm:$0xf] }
   0xc   : > { %v576_v3 = vor.u32 %v618_v1, %v575_v0  ;;  %v617_v4 = vld [vmem:[%s817_s2 + $0x8] sm:$0xf0]  ;;  %s822_s19 = smov (!%p212_p3, %s562_s19), 1  ;;  %v223_v7 = vld [vmem:[%s816_s1] sm:$0xff]  ;;  %vm251_vm0 = vcmask 261120   ;;  %vm292_vm1 = vcmask 64512  }
   0xd   : > { %v572_v5 = vor.u32 %v617_v4, %v571_v2  ;;  %s567_s28 = sshll.u32 %s822_s19, 3  ;;  %v638_v11 = vld [vmem:[%s819_s4] ss:$0 sm:$0xff]  ;;  %v586_v27 = vld [vmem:[%s817_s2 + $0x1c] sm:$0xf]  ;;  %vm310_vm2 = vcmask 1043456  }
   0xe   : > { %261 = vmatpush.bf16.msra.mxu0 %v576_v3  ;;  %s215_s6 = scalar_lea.vmem %s815_s0, %s567_s28  ;;  %v620_v28 = vld [vmem:[%s817_s2 + $0x24] sm:$0xf0]  ;;  %v582_v36 = vld [vmem:[%s817_s2 + $0x4] sm:$0xf]  ;;  %v619_v37 = vld [vmem:[%s817_s2 + $0xc] sm:$0xf0]  ;;  %s219_s9 = scalar_lea.vmem %s820_s5, %s567_s28 }
   0xf   : > { %v221_v6 = vld [vmem:[%s215_s6] sm:$0xff]  ;;  %v587_v29 = vor.u32 %v620_v28, %v586_v27  ;;  %v583_v38 = vor.u32 %v619_v37, %v582_v36  ;;  %v666_v48 = vmov 32.0   ;;  %v622_v61 = vld [vmem:[%s817_s2 + $0x28] sm:$0xf0]  ;;  %v591_v63 = vld [vmem:[%s817_s2 + $0x8] sm:$0xf] }
  0x10   : > { %v222_v8 = vmul.f32 5.656854, %v221_v6  ;;  %v639_v42 = vld [vmem:[%s819_s4 + $0x1] ss:$0 sm:$0xff]  ;;  %v621_v0 = vld [vmem:[%s817_s2 + $0x10] sm:$0xf0] }
  0x11   : > { %354 = vmatpush.bf16.msra.mxu3 %v587_v29  ;;  %v595_v60 = vld [vmem:[%s817_s2 + $0x20] sm:$0xf]  ;;  %v592_v1 = vor.u32 %v621_v0, %v591_v63  ;;  %v626_v2 = vld [vmem:[%s818_s3 + $0x18] sm:$0xff]  ;;  %vm464_vm7 = vcmask 523264  }
  0x12   : > { %262 = vmatpush.bf16.msra.mxu0 %v572_v5  ;;  %v224_v9 = vadd.f32 %v223_v7, %v222_v8  ;;  %v596_v62 = vor.u32 %v622_v61, %v595_v60  ;;  %v625_v5 = vld [vmem:[%s818_s3 + $0x10] sm:$0xff]  ;;  %v624_v7 = vld [vmem:[%s818_s3 + $0x8] sm:$0xff]  ;;  %v643_v28 = vld [vmem:[%s819_s4 + $0x3] ss:$0 sm:$0xff] }
  0x14   : > { %v233_v10 = vpack.c.bf16 %v224_v9, %v224_v9 }
  0x15   : > { %355 = vmatpush.bf16.msra.mxu3 %v583_v38 }
  0x16   : > { %577 = vmatmul.msk.bf16.vlgmr.msra.gmra.mxu0 %vm251_vm0, %v233_v10 }
  0x17   : > { %472 = vmatpush.bf16.msrb.mxu0 %v626_v2 }
  0x1b   : > { %473 = vmatpush.bf16.msrb.mxu0 %v625_v5 }
  0x1f   : > { %474 = vmatpush.bf16.msrb.mxu0 %v624_v7 }
  0x93   : > { %v264_v12 = vpop.f32.mrf.mxu0 }
  0x94   : > { %v265_v13 = vadd.f32 %v638_v11, %v264_v12 }
  0x96   : > { %v268_v14 = vpack.c.bf16 %v265_v13, %v265_v13 }
  0x98   : > { %270 = vrot.lane.b32.xlu0 %v268_v14, %s664_s11 }
  0x9b   : > { %v266_v15 = vpop.f32.mrf.mxu0 }
 0x10a   : > { %v271_v16 = vpop.permute.xlu0 %270 }
 0x10b   : > { %v276_v17 = vsel %vm251_vm0, %v271_v16, 0 }
 0x10c   : > { %285 = vmatpush.bf16.xpose.msra.mxu1 %v276_v17  ;;  %v641_v17 = vld [vmem:[%s819_s4 + $0x5] ss:$0 sm:$0xff] }
 0x113   : > { %578 = vmatmul.msk.bf16.vlgmr.msra.gmra.mxu1 %vm251_vm0, %v268_v14 }
 0x190   : > { %v287_v18 = vpop.f32.mrf.mxu1 }
 0x191   : > { %v291_v19 = vmul.f32 0.17677669, %v287_v18 }
 0x193   : > { %v293_v20 = vsel %vm292_vm1, %v291_v19, -inf }
 0x194   : > { %294 = vmax.xlane.f32.xlu0 %v293_v20 }
 0x198   : > { %v289_v21 = vpop.f32.mrf.mxu1 }
 0x199   : > { %v623_v21 = vld [vmem:[%s818_s3] sm:$0xff] }
 0x19a   : > { %475 = vmatpush.bf16.msrb.mxu0 %v623_v21 }
 0x207   : > { %v295_v22 = vpop.xlane.xlu0 %294 }
 0x208   : > { %v296_v23 = vsub.f32 %v291_v19, %v295_v22  ;;  %v642_v22 = vld [vmem:[%s819_s4 + $0x2] ss:$0 sm:$0xff] }
 0x20a   : > { %v297_v24 = vmul.f32 1.442695, %v296_v23 }
 0x20c   : > { %646 = vpow2.f32 %v297_v24 }
 0x212   : > { %v647_v25 = vpop.eup %646 }
 0x213   : > { %v299_v26 = vsel %vm292_vm1, %v647_v25, 0.0 }
 0x214   : > { %300 = vadd.xlane.f32.xlu1 %v299_v26 }
 0x22d   : > { %305 = vrot.lane.b32.xlu1 %v268_v14, %s665_s12  ;;  %v640_v14 = vld [vmem:[%s819_s4 + $0x4] ss:$0 sm:$0xff] }
 0x287   : > { %v301_v30 = vpop.xlane.xlu1 %300 }
 0x288   : > { %648 = vrcp.f32 %v301_v30 }
 0x289   : > { %650 = vrcp.f32 %v666_v48  ;;  %v644_v48 = vld [vmem:[%s819_s4 + $0x6] ss:$0 sm:$0xff] }
 0x28e   : > { %v649_v31 = vpop.eup %648 }
 0x28f   : > { %v303_v32 = vmul.f32 %v649_v31, %v647_v25  ;;  %v651_v49 = vpop.eup %650 }
 0x290   : > { %v366_v50 = vmul.f32 32.0, %v651_v49  ;;  %vm370_vm3 = vweird.f32 %v651_v49 }
 0x291   : > { %v304_v35 = vpack.c.bf16 %v303_v32, %v303_v32 }
 0x292   : > { %v367_v51 = vsub.f32 1.0, %v366_v50  ;;  %v645_v50 = vld [vmem:[%s819_s4 + $0x7] ss:$0 sm:$0xff] }
 0x294   : > { %v368_v52 = vmul.f32 %v651_v49, %v367_v51 }
 0x296   : > { %v369_v53 = vadd.f32 %v651_v49, %v368_v52 }
 0x298   : > { %v754_v54 = vsel %vm370_vm3, %v651_v49, %v369_v53 }
 0x29f   : > { %v306_v33 = vpop.permute.xlu1 %305 }
 0x2a0   : > { %v312_v34 = vsel %vm310_vm2, %v306_v33, 0 }
 0x2a1   : > { %321 = vmatpush.bf16.msra.mxu2 %v312_v34 }
 0x2a4   : > { %579 = vmatmul.msk.bf16.vlgmr.msra.gmra.mxu2 %vm292_vm1, %v304_v35 }
 0x2a5   : > { %422 = vmatpush.bf16.msrb.mxu2 %v596_v62 }
 0x2a9   : > { %423 = vmatpush.bf16.msrb.mxu2 %v592_v1 }
 0x327   : > { %v323_v39 = vpop.f32.mrf.mxu2 }
 0x328   : > { %v327_v40 = vpack.c.bf16 %v323_v39, %v323_v39 }
 0x32a   : > { %588 = vmatmul.msk.bf16.vlgmr.msra.gmra.mxu3 %vm251_vm0, %v327_v40 }
 0x32f   : > { %v325_v41 = vpop.f32.mrf.mxu2 }
 0x3ad   : > { %v357_v43 = vpop.f32.mrf.mxu3 }
 0x3ae   : > { %v358_v44 = vadd.f32 %v639_v42, %v357_v43 }
 0x3b0   : > { %v361_v45 = vadd.f32 %v358_v44, %v224_v9 }
 0x3b2   : > { %v362_v46 = vsel %vm251_vm0, %v361_v45, 0.0 }
 0x3b3   : > { %363 = vadd.xlane.f32.xlu2 %v362_v46 }
 0x3b5   : > { %v359_v47 = vpop.f32.mrf.mxu3 }
 0x426   : > { %v364_v55 = vpop.xlane.xlu2 %363 }
 0x427   : > { %v372_v56 = vmul.f32 %v754_v54, %v364_v55 }
 0x429   : > { %v373_v57 = vsub.f32 %v361_v45, %v372_v56 }
 0x42b   : > { %v374_v58 = vmul.f32 %v373_v57, %v373_v57 }
 0x42d   : > { %v375_v59 = vsel %vm251_vm0, %v374_v58, 0.0 }
 0x42e   : > { %376 = vadd.xlane.f32.xlu2 %v375_v59 }
 0x4a1   : > { %v377_v3 = vpop.xlane.xlu2 %376 }
 0x4a2   : > { %v378_v4 = vmul.f32 %v377_v3, %v754_v54 }
 0x4a4   : > { %v379_v6 = vadd.f32 1e-05, %v378_v4 }
 0x4a6   : > { %652 = vrsqrt.f32 %v379_v6  ;;  %vm386_vm5 = vweird.f32 %v379_v6 }
 0x4ac   : > { %v653_v8 = vpop.eup %652 }
 0x4ad   : > { %v381_v9 = vmul.f32 %v653_v8, %v379_v6  ;;  %vm387_vm4 = vweird.f32 %v653_v8 }
 0x4ae   : > { %vm388_vm6 = vmor %vm386_vm5, %vm387_vm4 }
 0x4af   : > { %v382_v10 = vmul.f32 %v653_v8, %v381_v9 }
 0x4b1   : > { %v383_v11 = vmul.f32 0.5, %v382_v10 }
 0x4b3   : > { %v384_v12 = vsub.f32 1.5, %v383_v11 }
 0x4b5   : > { %v385_v13 = vmul.f32 %v653_v8, %v384_v12 }
 0x4b7   : > { %v389_v15 = vsel %vm388_vm6, %v653_v8, %v385_v13 }
 0x4b8   : > { %v390_v16 = vmul.f32 %v389_v15, %v373_v57 }
 0x4ba   : > { %v392_v18 = vmul.f32 %v640_v14, %v390_v16 }
 0x4bc   : > { %v394_v19 = vadd.f32 %v641_v17, %v392_v18 }
 0x4be   : > { %v395_v20 = vpack.c.bf16 %v394_v19, %v394_v19 }
 0x4c0   : > { %597 = vmatmul.msk.bf16.vlgmr.msrb.gmra.mxu2 %vm251_vm0, %v395_v20 }
 0x543   : > { %v425_v23 = vpop.f32.mrf.mxu2 }
 0x544   : > { %v426_v24 = vadd.f32 %v642_v22, %v425_v23 }
 0x546   : > { %v429_v25 = vmax.f32 %v426_v24, 0.0 }
 0x548   : > { %v430_v26 = vpack.c.bf16 %v429_v25, %v429_v25 }
 0x54a   : > { %614 = vmatmul.msk.bf16.vlgmr.msrb.gmra.mxu0 %vm464_vm7, %v430_v26 }
 0x54b   : > { %v427_v27 = vpop.f32.mrf.mxu2 }
 0x5c7   : > { %v477_v29 = vpop.f32.mrf.mxu0 }
 0x5c8   : > { %v478_v30 = vadd.f32 %v643_v28, %v477_v29 }
 0x5ca   : > { %v481_v31 = vadd.f32 %v478_v30, %v394_v19 }
 0x5cc   : > { %v482_v32 = vsel %vm251_vm0, %v481_v31, 0.0 }
 0x5cd   : > { %483 = vadd.xlane.f32.xlu2 %v482_v32 }
 0x5cf   : > { %v479_v33 = vpop.f32.mrf.mxu0 }
 0x640   : > { %v484_v34 = vpop.xlane.xlu2 %483 }
 0x641   : > { %v485_v35 = vmul.f32 %v484_v34, %v754_v54 }
 0x643   : > { %v486_v36 = vsub.f32 %v481_v31, %v485_v35 }
 0x645   : > { %v487_v37 = vmul.f32 %v486_v36, %v486_v36 }
 0x647   : > { %v488_v38 = vsel %vm251_vm0, %v487_v37, 0.0 }
 0x648   : > { %489 = vadd.xlane.f32.xlu2 %v488_v38 }
 0x6bb   : > { %v490_v39 = vpop.xlane.xlu2 %489 }
 0x6bc   : > { %v491_v40 = vmul.f32 %v490_v39, %v754_v54 }
 0x6be   : > { %v492_v41 = vadd.f32 1e-05, %v491_v40 }
 0x6c0   : > { %654 = vrsqrt.f32 %v492_v41  ;;  %vm499_vm9 = vweird.f32 %v492_v41 }
 0x6c6   : > { %v655_v42 = vpop.eup %654 }
 0x6c7   : > { %v494_v43 = vmul.f32 %v655_v42, %v492_v41  ;;  %vm500_vm8 = vweird.f32 %v655_v42 }
 0x6c8   : > { %vm501_vm10 = vmor %vm499_vm9, %vm500_vm8 }
 0x6c9   : > { %v495_v44 = vmul.f32 %v655_v42, %v494_v43 }
 0x6cb   : > { %v496_v45 = vmul.f32 0.5, %v495_v44 }
 0x6cd   : > { %v497_v46 = vsub.f32 1.5, %v496_v45 }
 0x6cf   : > { %v498_v47 = vmul.f32 %v655_v42, %v497_v46 }
 0x6d1   : > { %v502_v49 = vsel %vm501_vm10, %v655_v42, %v498_v47 }
 0x6d2   : > { %v503_v51 = vmul.f32 %v502_v49, %v486_v36 }
 0x6d4   : > { %v505_v52 = vmul.f32 %v644_v48, %v503_v51 }
 0x6d6   : > { %v507_v53 = vadd.f32 %v645_v50, %v505_v52 }
 0x6d8   : > { %508 = vst.msk [vmem:[%s219_s9] sm:$0xff] %vm251_vm0, %v507_v53 }
 0x6d9 PF: > { %s15_s18 = sadd.s32 1, %s662_s18  }
 0x6da   : > { %p12_p4 = scmp.ge.s32.totalorder %s15_s18, 4  }
 0x6dc   :  { %14 = sbr.rel (!%p12_p4) target bundleno = 1 (0x1), region = 70 }

</bundles_post_ra>
